<compile_context>
chip_gen: v6e
topology: v6e:2x2x1
jax: 0.10.0
libtpu: 0.0.40
codegen_flags: <defaults>
</compile_context>

<pallas_src>
import functools

import jax
import jax.numpy as jnp
from jax.experimental import pallas as pl
from jax.experimental.pallas import tpu as pltpu

EPS = 1e-5
LANE = 128


def _temporal_tokens_kernel(x_ref, g1_ref, b1_ref, w_ref, bias_ref,
                            g2_ref, b2_ref, pos_ref, o_ref, *, dim_true):
    # x_ref: (1, TN, patch_dim) block of patches for one (row-tile, batch).
    x = x_ref[0].astype(jnp.float32)                         # (TN, PD)

    # --- LayerNorm over patch_dim (f32 stats) ---
    mu = jnp.mean(x, axis=-1, keepdims=True)
    xc = x - mu
    var = jnp.mean(xc * xc, axis=-1, keepdims=True)
    xn = xc * jax.lax.rsqrt(var + EPS)
    xn = xn * g1_ref[0] + b1_ref[0]                          # (TN, PD) f32

    # --- Linear(patch_dim -> dim): bf16 operands on the MXU, f32 accumulate ---
    y = jnp.dot(xn.astype(jnp.bfloat16), w_ref[...],
                preferred_element_type=jnp.float32)
    y = y + bias_ref[0]                                      # (TN, Dp) f32

    # --- LayerNorm over the *true* dim.  Padded columns of y are exactly 0
    #     (W columns / bias entries are zero-padded), so sum-based statistics
    #     divided by dim_true reproduce the unpadded LayerNorm exactly. ---
    inv_d = jnp.float32(1.0 / dim_true)
    mu2 = jnp.sum(y, axis=-1, keepdims=True) * inv_d
    var2 = jnp.sum(y * y, axis=-1, keepdims=True) * inv_d - mu2 * mu2
    yn = (y - mu2) * jax.lax.rsqrt(var2 + EPS)
    yn = yn * g2_ref[0] + b2_ref[0]                          # padded cols -> 0

    # --- add positional embedding (dropout p=0.0 -> identity) ---
    o_ref[0] = (yn + pos_ref[...].astype(jnp.float32)).astype(o_ref.dtype)


def _pad_last(a, new_size):
    pad = new_size - a.shape[-1]
    if pad == 0:
        return a
    widths = [(0, 0)] * (a.ndim - 1) + [(0, pad)]
    return jnp.pad(a, widths)


def _vmem_estimate(tn, patch_dim, dim_p, x_bytes, pos_bytes, out_bytes):
    # Pallas double-buffers every gridded operand; constant-index operands
    # (W, LN params) are also allocated twice, so count them x2.
    # TODO(synk): pipeline_mode=pl.Buffered(1) on the constant operands would
    # single-buffer them and free ~patch_dim*dim*2 bytes on v7x.
    return (2 * tn * patch_dim * x_bytes            # patch tile
            + 2 * tn * dim_p * out_bytes            # output tile
            + 2 * tn * dim_p * pos_bytes            # pos tile
            + 2 * patch_dim * dim_p * 2             # W (bf16)
            + 2 * (2 * patch_dim + 3 * dim_p) * 4)  # LN params + bias


def additional_temporal_tokens(video, params, image_patch_size,
                               frame_patch_size, *, tile_n=512,
                               patch_dtype=jnp.bfloat16,
                               out_dtype=jnp.float32,
                               vmem_budget_bytes=28 * 1024 * 1024):
    """video: [b, c, F, H, W].  Returns [b, num_patches, dim] (out_dtype)."""
    p1 = p2 = image_patch_size
    pf = frame_patch_size
    b, c, F, H, W = video.shape
    f, h, w = F // pf, H // p1, W // p2
    n = f * h * w
    patch_dim = c * p1 * p2 * pf

    g1, b1, W_lin, bias, g2, b2, pos = params
    dim = W_lin.shape[1]
    dim_p = max(LANE, ((dim + LANE - 1) // LANE) * LANE)     # lane-dense output

    # Rearrange 'b c (f pf) (h p1) (w p2) -> b (f h w) (p1 p2 pf c)'  (XLA glue,
    # done in the streaming dtype so the transpose pass moves half the bytes).
    # TODO(synk): fuse patch extraction into the kernel to drop this pass.
    x = video.astype(patch_dtype)
    x = x.reshape(b, c, f, pf, h, p1, w, p2)
    x = jnp.transpose(x, (0, 2, 4, 6, 5, 7, 3, 1))           # b f h w p1 p2 pf c
    x = x.reshape(b, n, patch_dim)

    # Parameters: W in bf16 for the MXU, pos in the streaming dtype, dim padded.
    w_pad = _pad_last(W_lin, dim_p).astype(jnp.bfloat16)
    bias_p = _pad_last(bias, dim_p).astype(jnp.float32)
    g2_p = _pad_last(g2, dim_p).astype(jnp.float32)
    b2_p = _pad_last(b2, dim_p).astype(jnp.float32)
    pos_p = _pad_last(pos, dim_p).astype(patch_dtype)
    g1 = g1.astype(jnp.float32)
    b1 = b1.astype(jnp.float32)

    # Patch-axis tile: multiple of 8, grid gets >= 2 steps (v7x has 2 TCs),
    # clamped so the VMEM footprint stays under the budget (v7x: 64 MiB total).
    TN = min(tile_n, n)
    if b == 1 and TN >= n and n > 8:
        TN = pl.cdiv(n, 2)
    if TN < n:
        TN = max(8, (TN // 8) * 8)
    x_bytes = jnp.dtype(patch_dtype).itemsize
    out_bytes = jnp.dtype(out_dtype).itemsize
    while TN > 8 and _vmem_estimate(TN, patch_dim, dim_p, x_bytes, x_bytes,
                                    out_bytes) > vmem_budget_bytes:
        TN = max(8, ((TN // 2 + 7) // 8) * 8)
    nt = pl.cdiv(n, TN)

    vmem_bytes = _vmem_estimate(TN, patch_dim, dim_p, x_bytes, x_bytes, out_bytes)
    vmem_limit = int(min(vmem_bytes + (8 << 20), 64 << 20))  # + internal scratch

    cost = pl.CostEstimate(
        flops=2 * b * n * patch_dim * dim_p,
        transcendentals=2 * b * n,                            # two rsqrt / row
        bytes_accessed=(b * n * patch_dim * x_bytes           # patches in
                        + patch_dim * dim_p * 2               # W (bf16)
                        + (2 * patch_dim + 3 * dim_p) * 4     # LN params + bias
                        + n * dim_p * x_bytes                 # pos (resident over batch)
                        + b * n * dim_p * out_bytes))         # output

    kernel = functools.partial(_temporal_tokens_kernel, dim_true=dim)

    out = pl.pallas_call(
        kernel,
        out_shape=jax.ShapeDtypeStruct((b, n, dim_p), out_dtype),
        grid_spec=pltpu.PrefetchScalarGridSpec(
            num_scalar_prefetch=0,
            grid=(nt, b),     # batch innermost -> pos tile stays VMEM-resident
            in_specs=[
                pl.BlockSpec((1, TN, patch_dim), lambda j, i: (i, j, 0)),  # patches
                pl.BlockSpec((1, patch_dim),     lambda j, i: (0, 0)),     # ln1 gamma
                pl.BlockSpec((1, patch_dim),     lambda j, i: (0, 0)),     # ln1 beta
                pl.BlockSpec((patch_dim, dim_p), lambda j, i: (0, 0)),     # linear W (bf16)
                pl.BlockSpec((1, dim_p),         lambda j, i: (0, 0)),     # linear b
                pl.BlockSpec((1, dim_p),         lambda j, i: (0, 0)),     # ln2 gamma
                pl.BlockSpec((1, dim_p),         lambda j, i: (0, 0)),     # ln2 beta
                pl.BlockSpec((TN, dim_p),        lambda j, i: (j, 0)),     # pos tile
            ],
            out_specs=pl.BlockSpec((1, TN, dim_p), lambda j, i: (i, j, 0)),
        ),
        compiler_params=pltpu.CompilerParams(
            dimension_semantics=("parallel", "parallel"),
            vmem_limit_bytes=vmem_limit),
        cost_estimate=cost,
    )(x, g1, b1, w_pad, bias_p, g2_p, b2_p, pos_p)

    if dim_p != dim:
        out = out[..., :dim]
    return out


def init_params(key, patch_dim, dim, num_patches):
    k_w, k_b, k_pos = jax.random.split(key, 3)
    # nn.LayerNorm affine init: ones / zeros.
    g1 = jnp.ones((1, patch_dim), jnp.float32)
    b1 = jnp.zeros((1, patch_dim), jnp.float32)
    # nn.Linear default init: uniform(-1/sqrt(in), 1/sqrt(in)).
    bound = 1.0 / (patch_dim ** 0.5)
    W_lin = jax.random.uniform(k_w, (patch_dim, dim), jnp.float32, -bound, bound)
    bias = jax.random.uniform(k_b, (1, dim), jnp.float32, -bound, bound)
    g2 = jnp.ones((1, dim), jnp.float32)
    b2 = jnp.zeros((1, dim), jnp.float32)
    # pos_embedding ~ randn(1, num_patches, dim) -> stored as (num_patches, dim)
    pos = jax.random.normal(k_pos, (num_patches, dim), jnp.float32)
    return (g1, b1, W_lin, bias, g2, b2, pos)


def reference(video, params, image_patch_size, frame_patch_size):
    """Pure-JAX f32 reference mirroring the PyTorch forward."""
    p1 = p2 = image_patch_size
    pf = frame_patch_size
    b, c, F, H, W = video.shape
    f, h, w = F // pf, H // p1, W // p2
    x = video.reshape(b, c, f, pf, h, p1, w, p2)
    x = jnp.transpose(x, (0, 2, 4, 6, 5, 7, 3, 1)).reshape(b, f * h * w,
                                                           c * p1 * p2 * pf)
    g1, b1, Wl, bias, g2, b2, pos = params

    def ln(v, g, be):
        mu = jnp.mean(v, -1, keepdims=True)
        var = jnp.mean((v - mu) ** 2, -1, keepdims=True)
        return (v - mu) * jax.lax.rsqrt(var + EPS) * g + be

    y = ln(x, g1[0], b1[0])
    y = y @ Wl + bias[0]
    y = ln(y, g2[0], b2[0])
    return y + pos[None]


if __name__ == "__main__":
    # Small shapes: batch=2, channels=4, frames=4, image 16x16,
    # image_patch=4, frame_patch=2 -> n = 2*4*4 = 32 patches,
    # patch_dim = 4*4*2*4 = 128.
    key = jax.random.PRNGKey(0)
    k_vid, k_par, k_par2 = jax.random.split(key, 3)

    B, C, FRAMES, H, W = 2, 4, 4, 16, 16
    IMG_PATCH, FRAME_PATCH = 4, 2
    N_PATCHES = (FRAMES // FRAME_PATCH) * (H // IMG_PATCH) * (W // IMG_PATCH)
    PATCH_DIM = C * IMG_PATCH * IMG_PATCH * FRAME_PATCH

    video = jax.random.normal(k_vid, (B, C, FRAMES, H, W), jnp.float32)

    # Case 1: lane-aligned dim (no padding path).
    DIM = 128
    params = init_params(k_par, PATCH_DIM, DIM, N_PATCHES)
    out = additional_temporal_tokens(video, params, IMG_PATCH, FRAME_PATCH)
    out = jax.block_until_ready(out)
    ref = reference(video, params, IMG_PATCH, FRAME_PATCH)
    assert out.shape == (B, N_PATCHES, DIM)
    assert out.dtype == jnp.float32
    # bf16 patch/pos streams + bf16 MXU vs f32 reference -> loosened tolerance.
    assert jnp.allclose(out, ref, atol=8e-2, rtol=5e-2), float(
        jnp.max(jnp.abs(out - ref)))

    # Case 2: non-lane-aligned dim -> exercises pad-to-128 + true-dim LN2 path.
    DIM2 = 96
    params2 = init_params(k_par2, PATCH_DIM, DIM2, N_PATCHES)
    out2 = additional_temporal_tokens(video, params2, IMG_PATCH, FRAME_PATCH)
    out2 = jax.block_until_ready(out2)
    ref2 = reference(video, params2, IMG_PATCH, FRAME_PATCH)
    assert out2.shape == (B, N_PATCHES, DIM2)
    assert jnp.allclose(out2, ref2, atol=8e-2, rtol=5e-2), float(
        jnp.max(jnp.abs(out2 - ref2)))

    print("KERNEL_OK")
</pallas_src>

<mosaic_0001>
module attributes {stable_mosaic.version = 11 : i64} {
  func.func @_temporal_tokens_kernel(%arg0: i32, %arg1: i32, %arg2: memref<1x32x128xbf16, #tpu.memory_space<vmem>>, %arg3: memref<1x128xf32, #tpu.memory_space<vmem>>, %arg4: memref<1x128xf32, #tpu.memory_space<vmem>>, %arg5: memref<128x128xbf16, #tpu.memory_space<vmem>>, %arg6: memref<1x128xf32, #tpu.memory_space<vmem>>, %arg7: memref<1x128xf32, #tpu.memory_space<vmem>>, %arg8: memref<1x128xf32, #tpu.memory_space<vmem>>, %arg9: memref<32x128xbf16, #tpu.memory_space<vmem>>, %arg10: memref<1x32x128xf32, #tpu.memory_space<vmem>>) attributes {dimension_semantics = [#tpu.dimension_semantics<parallel>, #tpu.dimension_semantics<parallel>], iteration_bounds = array<i64: 1, 2>, scalar_prefetch = 0 : i64, scratch_operands = 0 : i64, tpu.core_type = #tpu.core_type<tc>, window_params = [{transform_indices = @transform_0, window_bounds = array<i64: 1, 32, 128>}, {pipeline_mode = #tpu.pipeline_mode<synchronous>, transform_indices = @transform_1, window_bounds = array<i64: 1, 128>}, {pipeline_mode = #tpu.pipeline_mode<synchronous>, transform_indices = @transform_2, window_bounds = array<i64: 1, 128>}, {pipeline_mode = #tpu.pipeline_mode<synchronous>, transform_indices = @transform_3, window_bounds = array<i64: 128, 128>}, {pipeline_mode = #tpu.pipeline_mode<synchronous>, transform_indices = @transform_4, window_bounds = array<i64: 1, 128>}, {pipeline_mode = #tpu.pipeline_mode<synchronous>, transform_indices = @transform_5, window_bounds = array<i64: 1, 128>}, {pipeline_mode = #tpu.pipeline_mode<synchronous>, transform_indices = @transform_6, window_bounds = array<i64: 1, 128>}, {transform_indices = @transform_7, window_bounds = array<i64: 32, 128>}, {transform_indices = @transform_8, window_bounds = array<i64: 1, 32, 128>}]} {
    %c0 = arith.constant 0 : index
    %c0_0 = arith.constant 0 : index
    %c0_1 = arith.constant 0 : index
    %0 = vector.load %arg2[%c0, %c0_0, %c0_1] : memref<1x32x128xbf16, #tpu.memory_space<vmem>>, vector<1x32x128xbf16>
    %1 = vector.shape_cast %0 : vector<1x32x128xbf16> to vector<32x128xbf16>
    %2 = arith.extf %1 : vector<32x128xbf16> to vector<32x128xf32>
    %cst = arith.constant dense<0.000000e+00> : vector<32xf32>
    %3 = vector.multi_reduction <add>, %2, %cst [1] : vector<32x128xf32> to vector<32xf32>
    %4 = vector.shape_cast %3 : vector<32xf32> to vector<32x1xf32>
    %cst_2 = arith.constant 1.280000e+02 : f32
    %5 = vector.broadcast %cst_2 : f32 to vector<32x1xf32>
    %6 = arith.divf %4, %5 : vector<32x1xf32>
    %7 = vector.broadcast %6 : vector<32x1xf32> to vector<32x128xf32>
    %8 = arith.subf %2, %7 : vector<32x128xf32>
    %9 = arith.mulf %8, %8 : vector<32x128xf32>
    %cst_3 = arith.constant dense<0.000000e+00> : vector<32xf32>
    %10 = vector.multi_reduction <add>, %9, %cst_3 [1] : vector<32x128xf32> to vector<32xf32>
    %11 = vector.shape_cast %10 : vector<32xf32> to vector<32x1xf32>
    %cst_4 = arith.constant 1.280000e+02 : f32
    %12 = vector.broadcast %cst_4 : f32 to vector<32x1xf32>
    %13 = arith.divf %11, %12 : vector<32x1xf32>
    %cst_5 = arith.constant 9.99999974E-6 : f32
    %14 = vector.broadcast %cst_5 : f32 to vector<32x1xf32>
    %15 = arith.addf %13, %14 : vector<32x1xf32>
    %16 = math.rsqrt %15 : vector<32x1xf32>
    %17 = vector.broadcast %16 : vector<32x1xf32> to vector<32x128xf32>
    %18 = arith.mulf %8, %17 : vector<32x128xf32>
    %c0_6 = arith.constant 0 : index
    %c0_7 = arith.constant 0 : index
    %19 = vector.load %arg3[%c0_6, %c0_7] : memref<1x128xf32, #tpu.memory_space<vmem>>, vector<1x128xf32>
    %20 = vector.shape_cast %19 : vector<1x128xf32> to vector<128xf32>
    %21 = vector.shape_cast %20 : vector<128xf32> to vector<1x128xf32>
    %22 = vector.broadcast %21 : vector<1x128xf32> to vector<32x128xf32>
    %23 = arith.mulf %18, %22 : vector<32x128xf32>
    %c0_8 = arith.constant 0 : index
    %c0_9 = arith.constant 0 : index
    %24 = vector.load %arg4[%c0_8, %c0_9] : memref<1x128xf32, #tpu.memory_space<vmem>>, vector<1x128xf32>
    %25 = vector.shape_cast %24 : vector<1x128xf32> to vector<128xf32>
    %26 = vector.shape_cast %25 : vector<128xf32> to vector<1x128xf32>
    %27 = vector.broadcast %26 : vector<1x128xf32> to vector<32x128xf32>
    %28 = arith.addf %23, %27 : vector<32x128xf32>
    %29 = arith.truncf %28 : vector<32x128xf32> to vector<32x128xbf16>
    %c0_10 = arith.constant 0 : index
    %c0_11 = arith.constant 0 : index
    %30 = vector.load %arg5[%c0_10, %c0_11] : memref<128x128xbf16, #tpu.memory_space<vmem>>, vector<128x128xbf16>
    %cst_12 = arith.constant dense<0.000000e+00> : vector<32x128xf32>
    %31 = tpu.matmul %29, %30, %cst_12 {dimension_numbers = #tpu.dot_dimension_numbers<[1], [0], [0], [1], [0, 0, 1, 1], [], []>} : vector<32x128xbf16>, vector<128x128xbf16>, vector<32x128xf32> -> vector<32x128xf32>
    %c0_13 = arith.constant 0 : index
    %c0_14 = arith.constant 0 : index
    %32 = vector.load %arg6[%c0_13, %c0_14] : memref<1x128xf32, #tpu.memory_space<vmem>>, vector<1x128xf32>
    %33 = vector.shape_cast %32 : vector<1x128xf32> to vector<128xf32>
    %34 = vector.shape_cast %33 : vector<128xf32> to vector<1x128xf32>
    %35 = vector.broadcast %34 : vector<1x128xf32> to vector<32x128xf32>
    %36 = arith.addf %31, %35 : vector<32x128xf32>
    %cst_15 = arith.constant dense<0.000000e+00> : vector<32xf32>
    %37 = vector.multi_reduction <add>, %36, %cst_15 [1] : vector<32x128xf32> to vector<32xf32>
    %38 = vector.shape_cast %37 : vector<32xf32> to vector<32x1xf32>
    %cst_16 = arith.constant 7.812500e-03 : f32
    %39 = vector.broadcast %cst_16 : f32 to vector<32x1xf32>
    %40 = arith.mulf %38, %39 : vector<32x1xf32>
    %41 = arith.mulf %36, %36 : vector<32x128xf32>
    %cst_17 = arith.constant dense<0.000000e+00> : vector<32xf32>
    %42 = vector.multi_reduction <add>, %41, %cst_17 [1] : vector<32x128xf32> to vector<32xf32>
    %43 = vector.shape_cast %42 : vector<32xf32> to vector<32x1xf32>
    %cst_18 = arith.constant 7.812500e-03 : f32
    %44 = vector.broadcast %cst_18 : f32 to vector<32x1xf32>
    %45 = arith.mulf %43, %44 : vector<32x1xf32>
    %46 = arith.mulf %40, %40 : vector<32x1xf32>
    %47 = arith.subf %45, %46 : vector<32x1xf32>
    %48 = vector.broadcast %40 : vector<32x1xf32> to vector<32x128xf32>
    %49 = arith.subf %36, %48 : vector<32x128xf32>
    %cst_19 = arith.constant 9.99999974E-6 : f32
    %50 = vector.broadcast %cst_19 : f32 to vector<32x1xf32>
    %51 = arith.addf %47, %50 : vector<32x1xf32>
    %52 = math.rsqrt %51 : vector<32x1xf32>
    %53 = vector.broadcast %52 : vector<32x1xf32> to vector<32x128xf32>
    %54 = arith.mulf %49, %53 : vector<32x128xf32>
    %c0_20 = arith.constant 0 : index
    %c0_21 = arith.constant 0 : index
    %55 = vector.load %arg7[%c0_20, %c0_21] : memref<1x128xf32, #tpu.memory_space<vmem>>, vector<1x128xf32>
    %56 = vector.shape_cast %55 : vector<1x128xf32> to vector<128xf32>
    %57 = vector.shape_cast %56 : vector<128xf32> to vector<1x128xf32>
    %58 = vector.broadcast %57 : vector<1x128xf32> to vector<32x128xf32>
    %59 = arith.mulf %54, %58 : vector<32x128xf32>
    %c0_22 = arith.constant 0 : index
    %c0_23 = arith.constant 0 : index
    %60 = vector.load %arg8[%c0_22, %c0_23] : memref<1x128xf32, #tpu.memory_space<vmem>>, vector<1x128xf32>
    %61 = vector.shape_cast %60 : vector<1x128xf32> to vector<128xf32>
    %62 = vector.shape_cast %61 : vector<128xf32> to vector<1x128xf32>
    %63 = vector.broadcast %62 : vector<1x128xf32> to vector<32x128xf32>
    %64 = arith.addf %59, %63 : vector<32x128xf32>
    %c0_24 = arith.constant 0 : index
    %c0_25 = arith.constant 0 : index
    %65 = vector.load %arg9[%c0_24, %c0_25] : memref<32x128xbf16, #tpu.memory_space<vmem>>, vector<32x128xbf16>
    %66 = arith.extf %65 : vector<32x128xbf16> to vector<32x128xf32>
    %67 = arith.addf %64, %66 : vector<32x128xf32>
    %c0_26 = arith.constant 0 : index
    %c0_27 = arith.constant 0 : index
    %c0_28 = arith.constant 0 : index
    %68 = vector.load %arg10[%c0_26, %c0_27, %c0_28] : memref<1x32x128xf32, #tpu.memory_space<vmem>>, vector<1x32x128xf32>
    %69 = vector.shape_cast %68 : vector<1x32x128xf32> to vector<32x128xf32>
    %70 = vector.shape_cast %67 : vector<32x128xf32> to vector<1x32x128xf32>
    tpu.vector_store %arg10[%c0_26, %c0_27, %c0_28], %70 {strides = array<i32>} : memref<1x32x128xf32, #tpu.memory_space<vmem>>, vector<1x32x128xf32>,
    return
  }
  func.func @transform_0(%arg0: i32, %arg1: i32) -> (i32, i32, i32) {
    %c0_i32 = arith.constant 0 : i32
    %c0_i32_0 = arith.constant 0 : i32
    return %arg1, %arg0, %c0_i32 : i32, i32, i32
  }
  func.func @transform_1(%arg0: i32, %arg1: i32) -> (i32, i32) {
    %c0_i32 = arith.constant 0 : i32
    %c0_i32_0 = arith.constant 0 : i32
    %c0_i32_1 = arith.constant 0 : i32
    return %c0_i32, %c0_i32_0 : i32, i32
  }
  func.func @transform_2(%arg0: i32, %arg1: i32) -> (i32, i32) {
    %c0_i32 = arith.constant 0 : i32
    %c0_i32_0 = arith.constant 0 : i32
    %c0_i32_1 = arith.constant 0 : i32
    return %c0_i32, %c0_i32_0 : i32, i32
  }
  func.func @transform_3(%arg0: i32, %arg1: i32) -> (i32, i32) {
    %c0_i32 = arith.constant 0 : i32
    %c0_i32_0 = arith.constant 0 : i32
    %c0_i32_1 = arith.constant 0 : i32
    return %c0_i32, %c0_i32_0 : i32, i32
  }
  func.func @transform_4(%arg0: i32, %arg1: i32) -> (i32, i32) {
    %c0_i32 = arith.constant 0 : i32
    %c0_i32_0 = arith.constant 0 : i32
    %c0_i32_1 = arith.constant 0 : i32
    return %c0_i32, %c0_i32_0 : i32, i32
  }
  func.func @transform_5(%arg0: i32, %arg1: i32) -> (i32, i32) {
    %c0_i32 = arith.constant 0 : i32
    %c0_i32_0 = arith.constant 0 : i32
    %c0_i32_1 = arith.constant 0 : i32
    return %c0_i32, %c0_i32_0 : i32, i32
  }
  func.func @transform_6(%arg0: i32, %arg1: i32) -> (i32, i32) {
    %c0_i32 = arith.constant 0 : i32
    %c0_i32_0 = arith.constant 0 : i32
    %c0_i32_1 = arith.constant 0 : i32
    return %c0_i32, %c0_i32_0 : i32, i32
  }
  func.func @transform_7(%arg0: i32, %arg1: i32) -> (i32, i32) {
    %c0_i32 = arith.constant 0 : i32
    %c0_i32_0 = arith.constant 0 : i32
    return %arg0, %c0_i32 : i32, i32
  }
  func.func @transform_8(%arg0: i32, %arg1: i32) -> (i32, i32, i32) {
    %c0_i32 = arith.constant 0 : i32
    %c0_i32_0 = arith.constant 0 : i32
    return %arg1, %arg0, %c0_i32 : i32, i32, i32
  }
}

</mosaic_0001>

<bundles_post_ra>
// kernel: tpu_custom_call.1
= control target key start
LH: loop header
LB: loop body
LE: loop exit
PB: predicated region body
PF: predicated region fallthrough
CT: control target
= control target key end

     0   :  { %s1436_s0 = inlined_call_operand.hbm [shape: bf16[2,32,128], index: 0, kind: input, shape index: {}]   ;;  %s1437_s1 = inlined_call_operand.vmem [shape: f32[1,128], index: 1, kind: input, shape index: {}]   ;;  %s1438_s2 = inlined_call_operand.vmem [shape: f32[1,128], index: 2, kind: input, shape index: {}]   ;;  %s1439_s3 = inlined_call_operand.hbm [shape: bf16[128,128], index: 3, kind: input, shape index: {}]   ;;  %s1440_s4 = inlined_call_operand.vmem [shape: f32[1,128], index: 4, kind: input, shape index: {}]   ;;  %s1441_s5 = inlined_call_operand.vmem [shape: f32[1,128], index: 5, kind: input, shape index: {}]   ;;  %s1442_s6 = inlined_call_operand.vmem [shape: f32[1,128], index: 6, kind: input, shape index: {}]   ;;  %s1443_s7 = inlined_call_operand.hbm [shape: bf16[32,128], index: 7, kind: input, shape index: {}]   ;;  %s1444_s8 = inlined_call_operand.hbm [shape: f32[2,32,128], index: 8, kind: output, shape index: {}]  }
   0x1   :  { %1449 = sst [smem:[#allocation14_spill]] %s1439_s3 }
   0x2   :  { %1450 = sst [smem:[#allocation15_spill]] %s1443_s7 }
   0x3   :  { %13 = vsyncpa [#allocation3], 0 }
   0x4   :  { %15 = vsyncpa [#allocation3 + $0x1], 0 }
   0x5   :  { %16 = vsyncpa [#allocation6], 0 }
   0x6   :  { %17 = vsyncpa [#allocation4], 0 }
   0x7   :  { %19 = vsyncpa [#allocation4 + $0x1], 0  ;;  %s1206_s27 = smov 0   ;;  %s1208_s28 = smov 0  }
   0x8   :  { %s1210_s29 = smov 0   ;;  %s1212_s30 = smov 0  }
   0x9   :  { %s1214_s9 = smov 0   ;;  %s1216_s10 = smov 0  }
   0xa LB: > { %1451 = sst [smem:[#allocation12_spill]] %s1147_s9  ;;  %s794_s11 = sadd.s32 4294967295, %s1151_s10   ;;  %s1151_s10 = sphi %s1216_s10, %s25_s10   ;;  %s1147_s9 = sphi %s1214_s9, %s1468_s9   ;;  %s1143_s30 = sphi %s1212_s30, %s1467_s30   ;;  %s1139_s29 = sphi %s1210_s29, %s1471_s29   ;;  %s1135_s28 = sphi %s1208_s28, %s1470_s28   ;;  %s1131_s27 = sphi %s1206_s27, %s1469_s27  }
   0xb   : > { %s795_s12 = sadd.s32 4294967294, %s1151_s10   ;;  %p59_p0 = scmp.ne.s32.totalorder %s1135_s28, %s1131_s27 }
   0xc   : > { %p1240_p1 = scmp.eq.s32.totalorder %s794_s11, 0  ;;  %p1244_p2 = scmp.eq.s32.totalorder %s794_s11, 1 }
   0xd   : > { %p243_p3 = scmp.eq.s32.totalorder %s795_s12, 1  ;;  %p796_p5 = scmp.ge.s32.totalorder %s1151_s10, 1 }
   0xe   : > { %p1250_p4 = por %p1240_p1, %p59_p0  ;;  %p250_p7 = scmp.lt.s32.totalorder %s1151_s10, 3 }
   0xf   : > { %p1255_p6 = por %p243_p3, %p59_p0  ;;  %s1153_s18 = smov [#allocation5]  }
  0x10   : > { %p1260_p8 = pnand %p796_p5, %p250_p7  ;;  %s268_s19 = sshll.u32 %s1153_s18, 4  ;;  %s269_s19 = int_to_ptr.vmem [resolvable:$true] %s268_s19 }
  0x11   : > { %s1455_s16 = scalar_select %p1255_p6, 1, 0 }
  0x12   : > { %p888_p9 = pneg %p1260_p8  ;;  %s1154_s21 = smov [#allocation7]  }
  0x13   : > { %s293_s22 = sshll.u32 %s1154_s21, 4  ;;  %s998_s23 = scalar_lea.vmem %s269_s19, 1024  ;;  %s294_s22 = int_to_ptr.vmem [resolvable:$true] %s293_s22 }
  0x14   : > { %p1269_p11 = pnand %p888_p9, %p1240_p1  ;;  %p999_p13 = scmp.ne.s32.totalorder %s269_s19, %s998_s23 }
  0x15   : > { %p1006_p5 = scmp.lt.s32.totalorder %s269_s19, %s269_s19  ;;  %p1007_p7 = scmp.lt.s32.totalorder %s998_s23, %s998_s23 }
  0x16   : > { %p989_p12 = pneg %p1269_p11 }
  0x17   : > { %p1008_p10 = por %p1007_p7, %p1006_p5 }
  0x18   : > { %p1001_p0 = pnand %p999_p13, %p989_p12 }
  0x1a   : > { %p1002_p3 = pneg %p1001_p0 }
  0x1c   : > { %p1009_p9 = pnand %p1008_p10, %p1002_p3 }
  0x1e   : > { %1012 = shalt.err (!%p1009_p9)
}
  0x1f   : > { %s1445_s24 = smov 64   ;;  %s1446_s25 = smov 4  }
  0x20   : > { %s1458_s3 = sld [smem:[#allocation14_spill]]  ;;  %s1024_s12 = scalar_lea.vmem %s294_s22, 256 }
  0x21   : > { %p1025_p13 = scmp.ne.s32.totalorder %s294_s22, %s1024_s12  ;;  %p1032_p10 = scmp.lt.s32.totalorder %s294_s22, %s294_s22 }
  0x22   : > { %p1033_p3 = scmp.lt.s32.totalorder %s1024_s12, %s1024_s12 }
  0x23   : > { %p1027_p0 = pnand %p1025_p13, %p989_p12 }
  0x24   : > { %p1034_p7 = por %p1033_p3, %p1032_p10 }
  0x25   : > { %p1028_p5 = pneg %p1027_p0 }
  0x26   : > { %891 = dma.hbm_to_vmem [thread:$0]  (!%p1269_p11), %s1458_s3, 1024, %s269_s19, [#allocation6], %s1445_s24, %s1445_s24, %s1446_s25  }
  0x27   : > { %p1035_p9 = pnand %p1034_p7, %p1028_p5 }
  0x29   : > { %1038 = shalt.err (!%p1035_p9)
}
  0x2a   : > { %s1459_s7 = sld [smem:[#allocation15_spill]]  ;;  %s34_s19 = sadd.s32 1, %s1147_s9 }
  0x2b   : > { %s46_s20 = sadd.s32 1, %s1139_s29  ;;  %p35_p12 = scmp.ge.s32.totalorder %s34_s19, 2 }
  0x2c   : > { %p53_p13 = scmp.ne.s32.totalorder %s1139_s29, %s1135_s28  ;;  %p54_p0 = scmp.eq.s32.totalorder %s1151_s10, 0 }
  0x2d   : > { %p905_p5 = scmp.lt.s32.totalorder %s1151_s10, 2  ;;  %s1473_s19 = smov (%p35_p12, %s34_s19), 0 }
  0x2e   : > { %1460 = sst [smem:[#allocation13_spill]] %s1473_s19  ;;  %p55_p10 = por %p54_p0, %p53_p13 }
  0x2f   : > { %p1307_p3 = por %p1244_p2, %p53_p13  ;;  %s41_s26 = ssub.s32 %s1147_s9, %s1473_s19 }
  0x30   : > { %894 = dma.hbm_to_vmem [thread:$0]  (!%p1269_p11), %s1459_s7, 256, %s294_s22, [#allocation6], %s1445_s24, %s1445_s24, %s1446_s25  }
  0x31   : > { %s307_s11 = sand.u32 1, %s1139_s29   ;;  %p44_p7 = scmp.eq.s32.totalorder %s41_s26, 0 }
  0x32   : > { %s800_s22 = sshll.u32 %s307_s11, 4  ;;  %s826_s12 = sshll.u32 %s1147_s9, 8 }
  0x33   : > { %s1316_s18 = scalar_select %p44_p7, %s1139_s29, %s46_s20  }
  0x34   : > { %s319_s25 = scalar_lea.hbm %s1436_s0, %s826_s12  ;;  %s311_s3 = scalar_lea.vmem [#allocation2], %s800_s22 }
  0x35   : > { %s320_s7 = sshll.u32 %s311_s3, 4  ;;  %p1323_p11 = pnand %p905_p5, %p55_p10  ;;  %s321_s7 = int_to_ptr.vmem [resolvable:$true] %s320_s7 }
  0x36   : > { %s308_s19 = scalar_lea.sflag [#allocation3], %s307_s11  ;;  %s1052_s26 = scalar_lea.vmem %s321_s7, 256 }
  0x37   : > { %p1041_p2 = pneg %p1323_p11  ;;  %p1053_p9 = scmp.ne.s32.totalorder %s321_s7, %s1052_s26 }
  0x38   : > { %s1157_s20 = smov [#allocation2]  }
  0x39   : > { %p1055_p12 = pnand %p1053_p9, %p1041_p2  ;;  %s1057_s9 = sshll.u32 %s1157_s20, 4  ;;  %s1058_s9 = int_to_ptr.vmem [resolvable:$false] %s1057_s9 }
  0x3a   : > { %s1059_s24 = scalar_lea.vmem %s1058_s9, 512  ;;  %p1060_p0 = scmp.lt.s32.totalorder %s321_s7, %s1058_s9 }
  0x3b   : > { %p1056_p13 = pneg %p1055_p12  ;;  %p1061_p7 = scmp.lt.s32.totalorder %s1059_s24, %s1052_s26 }
  0x3d   : > { %p1062_p6 = por %p1061_p7, %p1060_p0 }
  0x3f   : > { %p1063_p5 = pnand %p1062_p6, %p1056_p13 }
  0x41   : > { %1066 = shalt.err (!%p1063_p5)
}
  0x42   : > { %s1463_s3 = smov 4   ;;  %s1464_s22 = smov 64  }
  0x43   : > { %898 = dma.hbm_to_vmem [thread:$0]  (!%p1323_p11), %s319_s25, 256, %s321_s7, %s308_s19, %s1464_s22, %s1464_s22, %s1463_s3  }
  0x44   : > { %332 = sbr.rel (%p1260_p8) target bundleno = 786 (0x312), region = 52  ;;  %s1337_s11 = sand.u32 (!%p1260_p8), 1, %s1135_s28  }
  0x45   : > { %s804_s9 = sshll.u32 (!%p1260_p8), %s1337_s11, 4  ;;  %s335_s12 = scalar_lea.sflag (!%p1260_p8), [#allocation3], %s1337_s11 }
  0x46   : > { %s338_s21 = scalar_lea.vmem (!%p1260_p8), [#allocation2], %s804_s9 }
  0x49   : > { %1118 = dma.done.wait (%p1250_p4), %s335_s12, 256  }
  0x4a   : > { %1120 = vsyncadd (%p1250_p4), %s335_s12, 4294967040 }
  0x4b   : > { %1122 = dma.done.wait (%p1240_p1), [#allocation6], 1280  }
  0x4c   : > { %1124 = vsyncadd (%p1240_p1), [#allocation6], 4294966016  ;;  %v829_v0 = vld [vmem:[%s338_s21] sm:$0xff]   ;;  %v844_v1 = vld [vmem:[%s338_s21 + $0x8] sm:$0xff]   ;;  %s807_s3 = sshll.u32 %s1337_s11, 5  ;;  %s827_s9 = sshll.u32 %s1143_s30, 9 }
  0x4d   : > { %v830_v2 = vunpack.c.l.bf16 %v829_v0  ;;  %v834_v3 = vunpack.c.l.bf16 %v844_v1  ;;  %v831_v4 = vunpack.c.h.bf16 %v829_v0  ;;  %v835_v5 = vunpack.c.h.bf16 %v844_v1  ;;  %v963_v22 = vld [vmem:[#allocation5 + $0x38] sm:$0xff]   ;;  %v964_v23 = vld [vmem:[#allocation5 + $0x30] sm:$0xff]   ;;  %v965_v24 = vld [vmem:[#allocation5 + $0x28] sm:$0xff]   ;;  %s378_s22 = scalar_lea.vmem [#allocation8], %s807_s3  ;;  %s1386_s13 = scalar_lea.hbm %s1444_s8, %s827_s9 }
  0x4e   : > { %856 = vmatprep.subr.bf16.mxu0 %v963_v22  ;;  %v966_v25 = vld [vmem:[#allocation5 + $0x20] sm:$0xff]   ;;  %v967_v26 = vld [vmem:[#allocation5 + $0x18] sm:$0xff]   ;;  %v968_v27 = vld [vmem:[#allocation5 + $0x10] sm:$0xff]   ;;  %s686_s12 = sshll.u32 %s378_s22, 4  ;;  %s671_s15 = scalar_lea.sflag [#allocation4], %s1337_s11  ;;  %s1388_s12 = int_to_ptr.vmem [resolvable:$true] %s686_s12 }
  0x4f   : > { %391 = vadd.xlane.f32.xlu0 %v830_v2  ;;  %395 = vadd.xlane.f32.xlu1 %v834_v3  ;;  %v969_v28 = vld [vmem:[#allocation5 + $0x8] sm:$0xff]   ;;  %v970_v29 = vld [vmem:[#allocation5] sm:$0xff]   ;;  %s1067_s17 = scalar_lea.vmem %s1388_s12, 512  ;;  %s1158_s30 = smov [#allocation8]  }
  0x50   : > { %857 = vmatpush3.bf16.msra.mxu0 %v963_v22  ;;  %v808_v44 = vld [vmem:[%s1437_s1] ss:$0 sm:$0xff]  ;;  %p1068_p1 = scmp.ne.s32.totalorder %s1388_s12, %s1067_s17  ;;  %s1071_s25 = sshll.u32 %s1158_s30, 4  ;;  %s1072_s25 = int_to_ptr.vmem [resolvable:$false] %s1071_s25 }
  0x51   : > { %858 = vmatprep.subr.bf16.mxu0 %v964_v23  ;;  %v809_v49 = vld [vmem:[%s1438_s2] ss:$0 sm:$0xff]  ;;  %s1073_s19 = scalar_lea.vmem %s1072_s25, 1024  ;;  %p1074_p8 = scmp.lt.s32.totalorder %s1388_s12, %s1072_s25 }
  0x52   : > { %v810_v62 = vld [vmem:[%s1440_s4] ss:$0 sm:$0xff]  ;;  %p1069_p4 = pnand %p1068_p1, %p1307_p3  ;;  %p1075_p10 = scmp.lt.s32.totalorder %s1073_s19, %s1067_s17 }
  0x53   : > { %393 = vadd.xlane.f32.xlu0 %v831_v4  ;;  %397 = vadd.xlane.f32.xlu1 %v835_v5 }
  0x54   : > { %859 = vmatpush3.bf16.msra.mxu0 %v964_v23  ;;  %p1070_p6 = pneg %p1069_p4  ;;  %p1076_p11 = por %p1075_p10, %p1074_p8 }
  0x55   : > { %860 = vmatprep.subr.bf16.mxu0 %v965_v24 }
  0x56   : > { %p1077_p2 = pnand %p1076_p11, %p1070_p6 }
  0x58   : > { %861 = vmatpush3.bf16.msra.mxu0 %v965_v24 }
  0x59   : > { %862 = vmatprep.subr.bf16.mxu0 %v966_v25 }
  0x5c   : > { %863 = vmatpush3.bf16.msra.mxu0 %v966_v25 }
  0x5d   : > { %864 = vmatprep.subr.bf16.mxu0 %v967_v26 }
  0x60   : > { %865 = vmatpush3.bf16.msra.mxu0 %v967_v26 }
  0x61   : > { %866 = vmatprep.subr.bf16.mxu0 %v968_v27 }
  0x64   : > { %867 = vmatpush3.bf16.msra.mxu0 %v968_v27 }
  0x65   : > { %868 = vmatprep.subr.bf16.mxu0 %v969_v28 }
  0x68   : > { %869 = vmatpush3.bf16.msra.mxu0 %v969_v28 }
  0x69   : > { %870 = vmatprep.subr.bf16.mxu0 %v970_v29 }
  0x6c   : > { %871 = vmatpush3.bf16.msra.mxu0 %v970_v29 }
  0xd8   : > { %v392_v6 = vpop.xlane.xlu0 %391  ;;  %v396_v7 = vpop.xlane.xlu1 %395 }
  0xd9   : > { %v400_v8 = vmul.f32 0.0078125, %v392_v6  ;;  %v402_v9 = vmul.f32 0.0078125, %v396_v7 }
  0xdb   : > { %v404_v10 = vsub.f32 %v830_v2, %v400_v8  ;;  %v1349_v11 = vsub.f32 %v834_v3, %v402_v9 }
  0xdc   : > { %v394_v12 = vpop.xlane.xlu0 %393  ;;  %v398_v13 = vpop.xlane.xlu1 %397 }
  0xdd   : > { %v401_v14 = vmul.f32 0.0078125, %v394_v12  ;;  %v408_v15 = vmul.f32 %v404_v10, %v404_v10  ;;  %v403_v16 = vmul.f32 0.0078125, %v398_v13  ;;  %v410_v19 = vmul.f32 %v1349_v11, %v1349_v11 }
  0xdf   : > { %v405_v17 = vsub.f32 %v831_v4, %v401_v14  ;;  %412 = vadd.xlane.f32.xlu0 %v408_v15  ;;  %v407_v18 = vsub.f32 %v835_v5, %v403_v16 }
  0xe1   : > { %v409_v20 = vmul.f32 %v405_v17, %v405_v17  ;;  %v411_v21 = vmul.f32 %v407_v18, %v407_v18 }
  0xe3   : > { %416 = vadd.xlane.f32.xlu0 %v410_v19  ;;  %414 = vadd.xlane.f32.xlu1 %v409_v20 }
  0xe7   : > { %418 = vadd.xlane.f32.xlu1 %v411_v21 }
 0x168   : > { %v413_v30 = vpop.xlane.xlu0 %412 }
 0x169   : > { %v420_v31 = vmul.f32 0.0078125, %v413_v30 }
 0x16b   : > { %v424_v32 = vadd.f32 1e-05, %v420_v31 }
 0x16c   : > { %v415_v33 = vpop.xlane.xlu1 %414  ;;  %v417_v34 = vpop.xlane.xlu0 %416 }
 0x16d   : > { %971 = vrsqrt.f32 %v424_v32  ;;  %v421_v35 = vmul.f32 0.0078125, %v415_v33  ;;  %v422_v36 = vmul.f32 0.0078125, %v417_v34 }
 0x16f   : > { %v425_v37 = vadd.f32 1e-05, %v421_v35  ;;  %v426_v38 = vadd.f32 1e-05, %v422_v36 }
 0x170   : > { %v419_v39 = vpop.xlane.xlu1 %418 }
 0x171   : > { %973 = vrsqrt.f32 %v425_v37  ;;  %v423_v40 = vmul.f32 0.0078125, %v419_v39 }
 0x172   : > { %975 = vrsqrt.f32 %v426_v38 }
 0x173   : > { %v427_v41 = vadd.f32 1e-05, %v423_v40 }
 0x175   : > { %977 = vrsqrt.f32 %v427_v41  ;;  %v819_v41 = vld [vmem:[%s1441_s5] ss:$0 sm:$0xff] }
 0x17a   : > { %v972_v42 = vpop.eup %971 }
 0x17b   : > { %v432_v43 = vmul.f32 %v972_v42, %v404_v10  ;;  %v837_v42 = vld [vmem:[#allocation7] sm:$0xff]  }
 0x17d   : > { %v443_v48 = vmul.f32 %v808_v44, %v432_v43 }
 0x17e   : > { %v974_v45 = vpop.eup %973 }
 0x17f   : > { %v976_v46 = vpop.eup %975  ;;  %v433_v47 = vmul.f32 %v974_v45, %v405_v17  ;;  %v454_v53 = vadd.f32 %v809_v49, %v443_v48 }
 0x180   : > { %v434_v50 = vmul.f32 %v976_v46, %v1349_v11  ;;  %v838_v46 = vunpack.c.l.bf16 %v837_v42 }
 0x181   : > { %v444_v51 = vmul.f32 %v808_v44, %v433_v47 }
 0x182   : > { %v978_v52 = vpop.eup %977  ;;  %v445_v56 = vmul.f32 %v808_v44, %v434_v50 }
 0x183   : > { %v455_v54 = vadd.f32 %v809_v49, %v444_v51  ;;  %v435_v55 = vmul.f32 %v978_v52, %v407_v18 }
 0x184   : > { %v456_v59 = vadd.f32 %v809_v49, %v445_v56 }
 0x185   : > { %v458_v57 = vpack.c.bf16 %v455_v54, %v454_v53  ;;  %v446_v58 = vmul.f32 %v808_v44, %v435_v55  ;;  %v820_v44 = vld [vmem:[%s1442_s6] ss:$0 sm:$0xff]  ;;  %v845_v53 = vld [vmem:[#allocation7 + $0x8] sm:$0xff]  }
 0x187   : > { %872 = vmatprep.mubr.bf16.mxu0 %v458_v57  ;;  %v457_v60 = vadd.f32 %v809_v49, %v446_v58  ;;  %v839_v57 = vunpack.c.h.bf16 %v837_v42 }
 0x189   : > { %v459_v61 = vpack.c.bf16 %v457_v60, %v456_v59  ;;  %v842_v60 = vunpack.c.l.bf16 %v845_v53 }
 0x18b   : > { %873 = vmatmul.mubr.bf16.vlgmr.msra.gmra.mxu0 %v459_v61 }
 0x24b   : > { %v874_v63 = vpop.f32.mrf.mxu0 }
 0x24c   : > { %v1363_v0 = vadd.f32 %v874_v63, %v810_v62 }
 0x24d   : > { %v565_v1 = vpop.f32.mrf.mxu0 }
 0x24e   : > { %584 = vadd.xlane.f32.xlu0 %v1363_v0  ;;  %v566_v3 = vadd.f32 %v810_v62, %v565_v1  ;;  %v594_v9 = vmul.f32 %v1363_v0, %v1363_v0 }
 0x24f   : > { %v875_v2 = vpop.f32.mrf.mxu0 }
 0x250   : > { %v1366_v4 = vadd.f32 %v875_v2, %v810_v62  ;;  %v592_v7 = vmul.f32 %v566_v3, %v566_v3  ;;  %v843_v2 = vunpack.c.h.bf16 %v845_v53 }
 0x251   : > { %v568_v5 = vpop.f32.mrf.mxu0 }
 0x252   : > { %586 = vadd.xlane.f32.xlu1 %v1366_v4  ;;  %580 = vadd.xlane.f32.xlu0 %v566_v3  ;;  %v569_v6 = vadd.f32 %v810_v62, %v568_v5  ;;  %v595_v10 = vmul.f32 %v1366_v4, %v1366_v4 }
 0x254   : > { %v593_v8 = vmul.f32 %v569_v6, %v569_v6 }
 0x256   : > { %582 = vadd.xlane.f32.xlu1 %v569_v6  ;;  %596 = vadd.xlane.f32.xlu0 %v592_v7 }
 0x25a   : > { %598 = vadd.xlane.f32.xlu1 %v593_v8  ;;  %600 = vadd.xlane.f32.xlu0 %v594_v9 }
 0x25e   : > { %602 = vadd.xlane.f32.xlu1 %v595_v10 }
 0x2d7   : > { %v585_v11 = vpop.xlane.xlu0 %584 }
 0x2d8   : > { %v590_v15 = vmul.f32 0.0078125, %v585_v11 }
 0x2da   : > { %v610_v22 = vmul.f32 %v590_v15, %v590_v15  ;;  %v618_v49 = vsub.f32 %v1363_v0, %v590_v15 }
 0x2db   : > { %v587_v12 = vpop.xlane.xlu1 %586  ;;  %v581_v13 = vpop.xlane.xlu0 %580 }
 0x2dc   : > { %v588_v14 = vmul.f32 0.0078125, %v581_v13  ;;  %v591_v23 = vmul.f32 0.0078125, %v587_v12 }
 0x2de   : > { %v608_v18 = vmul.f32 %v588_v14, %v588_v14  ;;  %v611_v33 = vmul.f32 %v591_v23, %v591_v23  ;;  %v616_v39 = vsub.f32 %v566_v3, %v588_v14  ;;  %v619_v55 = vsub.f32 %v1366_v4, %v591_v23 }
 0x2df   : > { %v583_v16 = vpop.xlane.xlu1 %582  ;;  %v597_v17 = vpop.xlane.xlu0 %596 }
 0x2e0   : > { %v589_v19 = vmul.f32 0.0078125, %v583_v16  ;;  %v604_v20 = vmul.f32 0.0078125, %v597_v17 }
 0x2e2   : > { %v612_v21 = vsub.f32 %v604_v20, %v608_v18  ;;  %v609_v26 = vmul.f32 %v589_v19, %v589_v19  ;;  %v617_v45 = vsub.f32 %v569_v6, %v589_v19 }
 0x2e3   : > { %v599_v24 = vpop.xlane.xlu1 %598  ;;  %v601_v25 = vpop.xlane.xlu0 %600 }
 0x2e4   : > { %v620_v27 = vadd.f32 1e-05, %v612_v21  ;;  %v605_v28 = vmul.f32 0.0078125, %v599_v24  ;;  %v606_v29 = vmul.f32 0.0078125, %v601_v25 }
 0x2e6   : > { %979 = vrsqrt.f32 %v620_v27  ;;  %v613_v30 = vsub.f32 %v605_v28, %v609_v26  ;;  %v614_v31 = vsub.f32 %v606_v29, %v610_v22 }
 0x2e7   : > { %v603_v32 = vpop.xlane.xlu1 %602 }
 0x2e8   : > { %v621_v34 = vadd.f32 1e-05, %v613_v30  ;;  %v622_v35 = vadd.f32 1e-05, %v614_v31  ;;  %v607_v36 = vmul.f32 0.0078125, %v603_v32 }
 0x2ea   : > { %981 = vrsqrt.f32 %v621_v34  ;;  %v615_v37 = vsub.f32 %v607_v36, %v611_v33 }
 0x2eb   : > { %983 = vrsqrt.f32 %v622_v35 }
 0x2ec   : > { %v623_v38 = vadd.f32 1e-05, %v615_v37 }
 0x2ee   : > { %985 = vrsqrt.f32 %v623_v38 }
 0x2f3   : > { %v980_v40 = vpop.eup %979 }
 0x2f4   : > { %v628_v43 = vmul.f32 %v980_v40, %v616_v39 }
 0x2f6   : > { %v639_v47 = vmul.f32 %v819_v41, %v628_v43 }
 0x2f7   : > { %v982_v48 = vpop.eup %981 }
 0x2f8   : > { %v984_v50 = vpop.eup %983  ;;  %v650_v51 = vadd.f32 %v820_v44, %v639_v47  ;;  %v629_v52 = vmul.f32 %v982_v48, %v617_v45 }
 0x2f9   : > { %v630_v54 = vmul.f32 %v984_v50, %v618_v49 }
 0x2fa   : > { %v662_v56 = vadd.f32 %v838_v46, %v650_v51  ;;  %v640_v58 = vmul.f32 %v819_v41, %v629_v52 }
 0x2fb   : > { %v986_v59 = vpop.eup %985  ;;  %v641_v61 = vmul.f32 %v819_v41, %v630_v54 }
 0x2fc   : > { %v651_v62 = vadd.f32 %v820_v44, %v640_v58  ;;  %v631_v63 = vmul.f32 %v986_v59, %v619_v55  ;;  %666 = vst [vmem:[%s378_s22] sm:$0xff] %v662_v56 }
 0x2fd   : > { %v652_v0 = vadd.f32 %v820_v44, %v641_v61 }
 0x2fe   : > { %v663_v1 = vadd.f32 %v839_v57, %v651_v62  ;;  %v642_v3 = vmul.f32 %v819_v41, %v631_v63 }
 0x2ff   : > { %v664_v5 = vadd.f32 %v842_v60, %v652_v0 }
 0x300   : > { %v653_v4 = vadd.f32 %v820_v44, %v642_v3  ;;  %667 = vst [vmem:[%s378_s22 + $0x8] sm:$0xff] %v663_v1 }
 0x301   : > { %668 = vst [vmem:[%s378_s22 + $0x10] sm:$0xff] %v664_v5 }
 0x302   : > { %v665_v6 = vadd.f32 %v843_v2, %v653_v4 }
 0x304   : > { %669 = vst [vmem:[%s378_s22 + $0x18] sm:$0xff] %v665_v6 }
 0x305   : > { %1080 = shalt.err (!%p1077_p2)
}
 0x306   : > { %s1081_s14 = scalar_lea.hbm %s1386_s13, 512  ;;  %s1085_s24 = scalar_lea.hbm %s1444_s8, 1024 }
 0x307   : > { %p1082_p9 = scmp.ne.s32.totalorder %s1386_s13, %s1081_s14  ;;  %p1086_p0 = scmp.lt.s32.totalorder %s1386_s13, %s1444_s8 }
 0x308   : > { %p1087_p7 = scmp.lt.s32.totalorder %s1085_s24, %s1081_s14 }
 0x309   : > { %p1083_p12 = pnand %p1082_p9, %p1307_p3 }
 0x30a   : > { %p1088_p5 = por %p1087_p7, %p1086_p0 }
 0x30b   : > { %p1084_p13 = pneg %p1083_p12 }
 0x30d   : > { %p1089_p1 = pnand %p1088_p5, %p1084_p13 }
 0x30f   : > { %1092 = shalt.err (!%p1089_p1)
}
 0x310   : > { %s1159_s9 = smov 128   ;;  %s1160_s21 = smov 8  }
 0x311   : > { %886 = dma.vmem_to_hbm [thread:$0]  (%p1307_p3), %s1388_s12, 512, %s1386_s13, %s671_s15, %s1159_s9, %s1159_s9, %s1160_s21  }
 0x312 PF: > { %s701_s7 = sand.u32 1, %s1131_s27   ;;  %p1465_p4 = scmp.ne.s32.totalorder %s1455_s16, 0 }
 0x313   : > { %p1466_p6 = scmp.ge.s32.totalorder %s1151_s10, 2  ;;  %s702_s17 = scalar_lea.sflag [#allocation4], %s701_s7 }
 0x315   : > { %p900_p8 = pnand %p1466_p6, %p1465_p4 }
 0x317   : > { %p901_p10 = pneg %p900_p8 }
 0x319   : > { %1126 = dma.done.wait (%p901_p10), %s702_s17, 512  }
 0x31a   : > { %1128 = vsyncadd (%p901_p10), %s702_s17, 4294966784  ;;  %s25_s10 = sadd.s32 1, %s1151_s10   ;;  %s1467_s30 = sld [smem:[#allocation12_spill]] }
 0x31b   : > { %p22_p11 = scmp.ge.s32.totalorder %s25_s10, 4   ;;  %s1468_s9 = sld [smem:[#allocation13_spill]] }
 0x31c   : > { %s1469_s27 = smov %s1135_s28  ;;  %s1470_s28 = smov %s1139_s29 }
 0x31d   : > { %s1471_s29 = smov %s1316_s18  ;;  %24 = sbr.rel (!%p22_p11) target bundleno = 10 (0xa), region = 106 }
 0x322   :  { %707 = vsyncpa [#allocation3], 1 }
 0x323   :  { %709 = vsyncpa [#allocation3 + $0x1], 1 }
 0x324   :  { %710 = vsyncpa [#allocation6], 1 }
 0x325   :  { %711 = vsyncpa [#allocation4], 1 }
 0x326   :  { %713 = vsyncpa [#allocation4 + $0x1], 1 }

</bundles_post_ra>
